<compile_context>
chip_gen: v5e
topology: v5e:2x2
jax: 0.10.0
libtpu: 0.0.40
codegen_flags: <defaults>
</compile_context>

<pallas_src>
import math

import jax
import jax.numpy as jnp
from jax import lax
from jax.experimental import pallas as pl
from jax.experimental.pallas import tpu as pltpu

block_size = 32
n_embd = 64
LANE = 128  # TPU lane width


def init_head_weights(wk, wq, wv):
    """Build the fused, lane-padded projection RHS once (weight-init time).

    wk / wq / wv : (C, H).  Returns (C, 3*Hp) with layout [v | k | q], each
    segment zero-padded from H to Hp = 128 lanes.  Zero padding keeps every
    in-kernel slice lane-aligned and the math exact (padded columns contribute
    0 to every contraction).
    """
    C, H = wk.shape
    Hp = max(LANE, pl.cdiv(H, LANE) * LANE)
    w_fused = jnp.zeros((C, 3 * Hp), dtype=wk.dtype)
    w_fused = w_fused.at[:, 0 * Hp:0 * Hp + H].set(wv)
    w_fused = w_fused.at[:, 1 * Hp:1 * Hp + H].set(wk)
    w_fused = w_fused.at[:, 2 * Hp:2 * Hp + H].set(wq)
    return w_fused


def head_kernel(x_ref, w_ref, o_ref):
    """One grid step == one batch chunk (whole batch by default).

    x_ref : (Bb*T, C)     VMEM tile of activations (pre-flattened in wrapper)
    w_ref : (C, 3*Hp)     fused projection weights: [v | k | q], lane-padded
    o_ref : (Bb, T, Hp)   lane-padded, lane-dense output (first H cols valid)
    """
    Bb, T, Hp = o_ref.shape
    C = x_ref.shape[-1]

    # Fused QKV projection: one (Bb*T, C) @ (C, 3*Hp) MXU matmul.
    proj = jnp.dot(x_ref[...], w_ref[...],
                   preferred_element_type=jnp.float32)          # (Bb*T, 3*Hp)
    proj = proj.reshape(Bb, T, 3 * Hp)                          # sublane split only
    v = proj[..., 0 * Hp:1 * Hp]                                # lane-aligned slices
    k = proj[..., 1 * Hp:2 * Hp]
    q = proj[..., 2 * Hp:3 * Hp]

    # Attention logits scaled by 1/sqrt(C) (C = n_embd, exactly as in the
    # reference module's `/ C ** 0.5`; NOTE standard SDPA would use
    # 1/sqrt(head_size)).  Contract last dims directly (no K^T transpose);
    # zero-padded columns contribute 0, so the result equals the H-wide dot.
    scale = 1.0 / math.sqrt(C)
    wei = jnp.einsum("bqd,bkd->bqk", q, k,
                     preferred_element_type=jnp.float32) * scale   # (Bb, T, T)

    # Causal mask: wei[b, i, j] = -inf where j > i (diagonal always kept, so
    # the max-subtracted softmax can never produce a NaN row).
    row = lax.broadcasted_iota(jnp.int32, (Bb, T, T), 1)
    col = lax.broadcasted_iota(jnp.int32, (Bb, T, T), 2)
    wei = jnp.where(col <= row, wei, -jnp.inf)

    # Numerically-stable softmax; exact division (EUP slot has ample slack in
    # this overhead-bound regime, so the approx reciprocal buys nothing).
    wei = wei - jnp.max(wei, axis=-1, keepdims=True)
    p = jnp.exp(wei)
    p = p / jnp.sum(p, axis=-1, keepdims=True)

    # TODO(synk): nn.Dropout(0.1) on the attention weights — identity in eval
    # mode; training-mode dropout would use pltpu.prng_seed/prng_random_bits.

    # (Bb, T, T) @ (Bb, T, Hp) -> (Bb, T, Hp); padded columns stay exactly
    # zero and the store is lane-dense (unmasked vst).
    out = jnp.einsum("bqk,bkd->bqd", p, v, preferred_element_type=jnp.float32)
    o_ref[...] = out.astype(o_ref.dtype)


def head_forward_padded(x, w_fused, *, batch_splits=1):
    """Hot-path entry point.

    x       : (B, T, C) activations.
    w_fused : (C, 3*Hp) from init_head_weights (built once, not per call).
    Returns the lane-dense padded output (B, T, Hp); the first head_size lanes
    hold the module's result, the rest are exactly zero.  Downstream consumers
    (e.g. a multi-head concat) should consume this directly instead of slicing.

    batch_splits=1 (default) runs the whole problem in one grid step (best on
    single-TensorCore v5e/v6e at this size).  batch_splits=2 feeds both v7x
    TensorCores via the 'parallel' grid axis once per-core work is non-trivial.
    """
    B, T, C = x.shape
    Hp = w_fused.shape[1] // 3
    assert B % batch_splits == 0
    Bb = B // batch_splits

    # Free metadata reshape in XLA; avoids any in-kernel relayout of the input.
    x2d = x.reshape(B * T, C)

    return pl.pallas_call(
        head_kernel,
        out_shape=jax.ShapeDtypeStruct((B, T, Hp), x.dtype),
        grid_spec=pltpu.PrefetchScalarGridSpec(
            num_scalar_prefetch=0,
            grid=(batch_splits,),
            in_specs=[
                pl.BlockSpec((Bb * T, C), lambda i: (i, 0)),
                pl.BlockSpec((C, 3 * Hp), lambda i: (0, 0)),
            ],
            out_specs=pl.BlockSpec((Bb, T, Hp), lambda i: (i, 0, 0)),
        ),
        compiler_params=pltpu.CompilerParams(
            dimension_semantics=("parallel",)),
    )(x2d, w_fused)


def head_forward(x, w_fused, head_size, *, batch_splits=1):
    """Compatibility wrapper matching the PyTorch module's (B, T, head_size)
    output.  The trailing slice is a non-lane-dense copy — prefer
    head_forward_padded in a fused multi-head pipeline."""
    return head_forward_padded(x, w_fused, batch_splits=batch_splits)[..., :head_size]


def reference_forward(x, wk, wq, wv):
    """Pure-JAX reference mirroring the PyTorch forward (eval mode),
    computed at Precision.HIGHEST so it serves as ground truth."""
    B, T, C = x.shape
    hi = lax.Precision.HIGHEST
    k = jnp.einsum("btc,ch->bth", x, wk, precision=hi)
    q = jnp.einsum("btc,ch->bth", x, wq, precision=hi)
    v = jnp.einsum("btc,ch->bth", x, wv, precision=hi)
    wei = jnp.einsum("bqh,bkh->bqk", q, k, precision=hi) / math.sqrt(C)
    mask = jnp.tril(jnp.ones((T, T), dtype=bool))
    wei = jnp.where(mask, wei, -jnp.inf)
    wei = jax.nn.softmax(wei, axis=-1)
    return jnp.einsum("bqk,bkh->bqh", wei, v, precision=hi)


if __name__ == "__main__":
    head_size = 16
    B, T, C = 2, block_size, n_embd

    key = jax.random.PRNGKey(0)
    kx, kk, kq, kv = jax.random.split(key, 4)

    x = jax.random.normal(kx, (B, T, C), dtype=jnp.float32)
    # Deterministic "Linear" weights (PyTorch-like uniform init range).
    init_scale = 1.0 / math.sqrt(C)
    wk = jax.random.uniform(kk, (C, head_size), jnp.float32, -init_scale, init_scale)
    wq = jax.random.uniform(kq, (C, head_size), jnp.float32, -init_scale, init_scale)
    wv = jax.random.uniform(kv, (C, head_size), jnp.float32, -init_scale, init_scale)

    # Weight fusion / lane padding happens ONCE here (init time), not per call.
    w_fused = jax.block_until_ready(init_head_weights(wk, wq, wv))

    fwd = jax.jit(head_forward_padded)
    out_padded = jax.block_until_ready(fwd(x, w_fused))   # lane-dense hot path

    ref = reference_forward(x, wk, wq, wv)
    out = out_padded[..., :head_size]        # verification-only slice
    assert out_padded.shape == (B, T, LANE)
    assert out.shape == (B, T, head_size)
    # Exact division in the softmax -> tolerance tightened from 5e-3 to 2e-4.
    assert jnp.allclose(out, ref, atol=2e-4, rtol=2e-4), "mismatch vs reference"
    # Padded lanes must be (essentially) exact zeros.
    assert jnp.allclose(out_padded[..., head_size:], 0.0, atol=1e-6)

    print("KERNEL_OK")
</pallas_src>

<mosaic_0001>
module attributes {stable_mosaic.version = 11 : i64} {
  func.func @head_kernel(%arg0: i32, %arg1: memref<64x64xf32, #tpu.memory_space<vmem>>, %arg2: memref<64x384xf32, #tpu.memory_space<vmem>>, %arg3: memref<2x32x128xf32, #tpu.memory_space<vmem>>) attributes {dimension_semantics = [#tpu.dimension_semantics<parallel>], iteration_bounds = array<i64: 1>, scalar_prefetch = 0 : i64, scratch_operands = 0 : i64, tpu.core_type = #tpu.core_type<tc>, window_params = [{transform_indices = @transform_0, window_bounds = array<i64: 64, 64>}, {pipeline_mode = #tpu.pipeline_mode<synchronous>, transform_indices = @transform_1, window_bounds = array<i64: 64, 384>}, {transform_indices = @transform_2, window_bounds = array<i64: 2, 32, 128>}]} {
    %c0 = arith.constant 0 : index
    %c0_0 = arith.constant 0 : index
    %0 = vector.load %arg1[%c0, %c0_0] : memref<64x64xf32, #tpu.memory_space<vmem>>, vector<64x64xf32>
    %c0_1 = arith.constant 0 : index
    %c0_2 = arith.constant 0 : index
    %1 = vector.load %arg2[%c0_1, %c0_2] : memref<64x384xf32, #tpu.memory_space<vmem>>, vector<64x384xf32>
    %cst = arith.constant dense<0.000000e+00> : vector<64x384xf32>
    %2 = tpu.matmul %0, %1, %cst {dimension_numbers = #tpu.dot_dimension_numbers<[1], [0], [0], [1], [0, 0, 1, 1], [], []>} : vector<64x64xf32>, vector<64x384xf32>, vector<64x384xf32> -> vector<64x384xf32>
    %3 = vector.shape_cast %2 : vector<64x384xf32> to vector<2x32x384xf32>
    %4 = vector.extract_strided_slice %3 {offsets = [0, 0, 0], sizes = [2, 32, 128], strides = [1, 1, 1]} : vector<2x32x384xf32> to vector<2x32x128xf32>
    %5 = vector.extract_strided_slice %3 {offsets = [0, 0, 128], sizes = [2, 32, 128], strides = [1, 1, 1]} : vector<2x32x384xf32> to vector<2x32x128xf32>
    %6 = vector.extract_strided_slice %3 {offsets = [0, 0, 256], sizes = [2, 32, 128], strides = [1, 1, 1]} : vector<2x32x384xf32> to vector<2x32x128xf32>
    "tpu.trace_start"() <{level = 10 : i32, message = "bqd,bkd->bqk"}> : () -> ()
    %cst_3 = arith.constant dense<0.000000e+00> : vector<2x32x32xf32>
    %7 = tpu.matmul %6, %5, %cst_3 {dimension_numbers = #tpu.dot_dimension_numbers<[2], [2], [1], [1], [0, 0, 0, 1, 1, 1], [0], [0]>} : vector<2x32x128xf32>, vector<2x32x128xf32>, vector<2x32x32xf32> -> vector<2x32x32xf32>
    "tpu.trace_stop"() : () -> ()
    %cst_4 = arith.constant 1.250000e-01 : f32
    %8 = vector.broadcast %cst_4 : f32 to vector<2x32x32xf32>
    %9 = arith.mulf %7, %8 : vector<2x32x32xf32>
    %10 = tpu.iota {dimensions = array<i32: 1>} : vector<2x32x32xi32>
    %11 = tpu.iota {dimensions = array<i32: 2>} : vector<2x32x32xi32>
    %12 = arith.cmpi sle, %11, %10 : vector<2x32x32xi32>
    %cst_5 = arith.constant 0xFF800000 : f32
    %13 = vector.broadcast %cst_5 : f32 to vector<2x32x32xf32>
    %14 = arith.select %12, %9, %13 : vector<2x32x32xi1>, vector<2x32x32xf32>
    %cst_6 = arith.constant dense<0xFF800000> : vector<2x32xf32>
    %15 = vector.multi_reduction <maximumf>, %14, %cst_6 [2] : vector<2x32x32xf32> to vector<2x32xf32>
    %16 = vector.shape_cast %15 : vector<2x32xf32> to vector<2x32x1xf32>
    %17 = vector.broadcast %16 : vector<2x32x1xf32> to vector<2x32x32xf32>
    %18 = arith.subf %14, %17 : vector<2x32x32xf32>
    %19 = math.exp %18 : vector<2x32x32xf32>
    %cst_7 = arith.constant dense<0.000000e+00> : vector<2x32xf32>
    %20 = vector.multi_reduction <add>, %19, %cst_7 [2] : vector<2x32x32xf32> to vector<2x32xf32>
    %21 = vector.shape_cast %20 : vector<2x32xf32> to vector<2x32x1xf32>
    %22 = vector.broadcast %21 : vector<2x32x1xf32> to vector<2x32x32xf32>
    %23 = arith.divf %19, %22 : vector<2x32x32xf32>
    "tpu.trace_start"() <{level = 10 : i32, message = "bqk,bkd->bqd"}> : () -> ()
    %cst_8 = arith.constant dense<0.000000e+00> : vector<2x32x128xf32>
    %24 = tpu.matmul %23, %4, %cst_8 {dimension_numbers = #tpu.dot_dimension_numbers<[2], [1], [1], [2], [0, 0, 0, 1, 1, 2], [0], [0]>} : vector<2x32x32xf32>, vector<2x32x128xf32>, vector<2x32x128xf32> -> vector<2x32x128xf32>
    "tpu.trace_stop"() : () -> ()
    %c0_9 = arith.constant 0 : index
    %c0_10 = arith.constant 0 : index
    %c0_11 = arith.constant 0 : index
    %25 = vector.load %arg3[%c0_9, %c0_10, %c0_11] : memref<2x32x128xf32, #tpu.memory_space<vmem>>, vector<2x32x128xf32>
    tpu.vector_store %arg3[%c0_9, %c0_10, %c0_11], %24 {strides = array<i32>} : memref<2x32x128xf32, #tpu.memory_space<vmem>>, vector<2x32x128xf32>,
    return
  }
  func.func @transform_0(%arg0: i32) -> (i32, i32) {
    %c0_i32 = arith.constant 0 : i32
    %c0_i32_0 = arith.constant 0 : i32
    return %arg0, %c0_i32 : i32, i32
  }
  func.func @transform_1(%arg0: i32) -> (i32, i32) {
    %c0_i32 = arith.constant 0 : i32
    %c0_i32_0 = arith.constant 0 : i32
    %c0_i32_1 = arith.constant 0 : i32
    return %c0_i32, %c0_i32_0 : i32, i32
  }
  func.func @transform_2(%arg0: i32) -> (i32, i32, i32) {
    %c0_i32 = arith.constant 0 : i32
    %c0_i32_0 = arith.constant 0 : i32
    %c0_i32_1 = arith.constant 0 : i32
    return %arg0, %c0_i32, %c0_i32_0 : i32, i32, i32
  }
}

</mosaic_0001>

<bundles_post_ra>
// kernel: head_forward_padded.1
= control target key start
LH: loop header
LB: loop body
LE: loop exit
PB: predicated region body
PF: predicated region fallthrough
CT: control target
= control target key end

     0   :  { %7 = vsyncpa [#allocation3], 0  ;;  %s922_s0 = inlined_call_operand.hbm [shape: f32[64,64], index: 0, kind: input, shape index: {}]   ;;  %s923_s1 = inlined_call_operand.hbm [shape: f32[64,384], index: 1, kind: input, shape index: {}]   ;;  %s924_s2 = inlined_call_operand.hbm [shape: f32[2,32,128], index: 2, kind: output, shape index: {}]  }
   0x1   :  { %8 = vsyncpa [#allocation6], 0 }
   0x2   :  { %9 = vsyncpa [#allocation4], 0  ;;  %s14_s11 = sshll.u32 %s922_s0, 4  ;;  %s777_s12 = smov [#allocation2]   ;;  %s15_s11 = int_to_ptr.hbm [resolvable:$true] %s14_s11 }
   0x3   :  { %s16_s13 = sshll.u32 %s777_s12, 4  ;;  %s27_s16 = sshll.u32 %s923_s1, 4  ;;  %s17_s13 = int_to_ptr.vmem [resolvable:$true] %s16_s13  ;;  %s28_s16 = int_to_ptr.hbm [resolvable:$true] %s27_s16 }
   0x4   :  { %s778_s17 = smov 128   ;;  %s779_s18 = smov 8  }
   0x5   :  { %22 = dma.hbm_to_vmem [thread:$0]  %s15_s11, 1024, %s17_s13, [#allocation3], %s778_s17, %s778_s17, %s779_s18  }
   0x6   :  { %s780_s19 = smov [#allocation5]   ;;  %s781_s21 = smov 384  }
   0x7   :  { %s29_s20 = sshll.u32 %s780_s19, 4  ;;  %s782_s0 = smov 24   ;;  %s30_s20 = int_to_ptr.vmem [resolvable:$true] %s29_s20 }
   0x8   :  { %35 = dma.hbm_to_vmem [thread:$0]  %s28_s16, 3072, %s30_s20, [#allocation6], %s781_s21, %s781_s21, %s782_s0  }
   0x9   :  { %771 = dma.done.wait [#allocation3], 1024  }
   0xa   :  { %772 = vsyncadd [#allocation3], 4294966272 }
   0xb   :  { %773 = dma.done.wait [#allocation6], 3072  }
   0xc   :  { %774 = vsyncadd [#allocation6], 4294964224  ;;  %v74_v0 = vld [vmem:[#allocation5 + $0xb0] sm:$0xff]  ;;  %v71_v1 = vld [vmem:[#allocation5 + $0x98] sm:$0xff]  ;;  %vm76_vm0 = vcmask 523264   ;;  %v290_v50 = vlaneseq  ;;  %vm309_vm2 = vcmask 261120  }
   0xd   :  { %150 = vmatpush.msra.mxu1 %v74_v0  ;;  %v73_v2 = vld [vmem:[#allocation5 + $0xa8] sm:$0xff]  ;;  %652 = vmatpush.msra.mxu3 %v74_v0  ;;  %v68_v3 = vld [vmem:[#allocation5 + $0x80] sm:$0xff]  ;;  %v70_v4 = vld [vmem:[#allocation5 + $0x90] sm:$0xff]  ;;  %s783_s1 = smov [#allocation7]   ;;  %s598_s25 = sshll.u32 %s924_s2, 4  ;;  %s599_s25 = int_to_ptr.hbm [resolvable:$true] %s598_s25 }
   0xe   :  { %644 = vmatpush.msra.mxu2 %v73_v2  ;;  %109 = vmatpush.msra.mxu0 %v73_v2  ;;  %v67_v5 = vld [vmem:[#allocation5 + $0x78] sm:$0xff]  ;;  %v65_v6 = vld [vmem:[#allocation5 + $0x68] sm:$0xff]  ;;  %v64_v7 = vld [vmem:[#allocation5 + $0x60] sm:$0xff]  ;;  %v291_v51 = vshrl.u32 %v290_v50, 7  ;;  %v296_v52 = vand.u32 127, %v290_v50  ;;  %s596_s22 = sshll.u32 %s783_s1, 4  ;;  %s597_s22 = int_to_ptr.vmem [resolvable:$true] %s596_s22 }
   0xf   :  { %151 = vmatpush.msra.mxu1 %v71_v1  ;;  %653 = vmatpush.msra.mxu3 %v71_v1  ;;  %v62_v8 = vld [vmem:[#allocation5 + $0x50] sm:$0xff]  ;;  %v61_v9 = vld [vmem:[#allocation5 + $0x48] sm:$0xff]  ;;  %v59_v10 = vld [vmem:[#allocation5 + $0x38] sm:$0xff] }
  0x10   :  { %645 = vmatpush.msra.mxu2 %v70_v4  ;;  %110 = vmatpush.msra.mxu0 %v70_v4  ;;  %v58_v11 = vld [vmem:[#allocation5 + $0x30] sm:$0xff]  ;;  %v56_v12 = vld [vmem:[#allocation5 + $0x20] sm:$0xff]  ;;  %v55_v13 = vld [vmem:[#allocation5 + $0x18] sm:$0xff]  ;;  %vm297_vm1 = vcmp.le.s32.totalorder %v296_v52, %v291_v51  ;;  %v292_v57 = vadd.s32 8, %v291_v51  ;;  %v293_v62 = vadd.s32 16, %v291_v51 }
  0x11   :  { %152 = vmatpush.msra.mxu1 %v68_v3  ;;  %654 = vmatpush.msra.mxu3 %v68_v3  ;;  %v53_v14 = vld [vmem:[#allocation5 + $0x8] sm:$0xff]  ;;  %v44_v15 = vld [vmem:[#allocation2] sm:$0xff]  ;;  %v50_v17 = vld [vmem:[#allocation2 + $0x30] sm:$0xff] }
  0x12   :  { %646 = vmatpush.msra.mxu2 %v67_v5  ;;  %111 = vmatpush.msra.mxu0 %v67_v5  ;;  %v52_v16 = vld [vmem:[#allocation5] sm:$0xff]  ;;  %v75_v18 = vld [vmem:[#allocation5 + $0xb8] sm:$0xff]  ;;  %v69_v20 = vld [vmem:[#allocation5 + $0x88] sm:$0xff]  ;;  %vm298_vm3 = vcmp.le.s32.totalorder %v296_v52, %v292_v57  ;;  %vm299_vm4 = vcmp.le.s32.totalorder %v296_v52, %v293_v62 }
  0x13   :  { %153 = vmatpush.msra.mxu1 %v65_v6  ;;  %655 = vmatpush.msra.mxu3 %v65_v6  ;;  %v72_v19 = vld [vmem:[#allocation5 + $0xa0] sm:$0xff]  ;;  %v45_v21 = vld [vmem:[#allocation2 + $0x8] sm:$0xff]  ;;  %v66_v22 = vld [vmem:[#allocation5 + $0x70] sm:$0xff]  ;;  %v294_v6 = vadd.s32 24, %v291_v51 }
  0x14   :  { %647 = vmatpush.msra.mxu2 %v64_v7  ;;  %112 = vmatpush.msra.mxu0 %v64_v7  ;;  %v51_v23 = vld [vmem:[#allocation2 + $0x38] sm:$0xff]  ;;  %v60_v25 = vld [vmem:[#allocation5 + $0x40] sm:$0xff]  ;;  %v57_v26 = vld [vmem:[#allocation5 + $0x28] sm:$0xff] }
  0x15   :  { %154 = vmatpush.msra.mxu1 %v62_v8  ;;  %656 = vmatpush.msra.mxu3 %v62_v8  ;;  %v63_v24 = vld [vmem:[#allocation5 + $0x58] sm:$0xff]  ;;  %v46_v27 = vld [vmem:[#allocation2 + $0x10] sm:$0xff]  ;;  %v48_v30 = vld [vmem:[#allocation2 + $0x20] sm:$0xff]  ;;  %vm300_vm5 = vcmp.le.s32.totalorder %v296_v52, %v294_v6 }
  0x16   :  { %648 = vmatpush.msra.mxu2 %v61_v9  ;;  %113 = vmatpush.msra.mxu0 %v61_v9  ;;  %v54_v28 = vld [vmem:[#allocation5 + $0x10] sm:$0xff]  ;;  %v47_v29 = vld [vmem:[#allocation2 + $0x18] sm:$0xff]  ;;  %v49_v31 = vld [vmem:[#allocation2 + $0x28] sm:$0xff] }
  0x17   :  { %155 = vmatpush.msra.mxu1 %v59_v10  ;;  %657 = vmatpush.msra.mxu3 %v59_v10 }
  0x18   :  { %649 = vmatpush.msra.mxu2 %v58_v11  ;;  %114 = vmatpush.msra.mxu0 %v58_v11 }
  0x19   :  { %156 = vmatpush.msra.mxu1 %v56_v12  ;;  %658 = vmatpush.msra.mxu3 %v56_v12 }
  0x1a   :  { %650 = vmatpush.msra.mxu2 %v55_v13  ;;  %115 = vmatpush.msra.mxu0 %v55_v13 }
  0x1b   :  { %157 = vmatpush.msra.mxu1 %v53_v14  ;;  %659 = vmatpush.msra.mxu3 %v53_v14 }
  0x1c   :  { %620 = vmatmul.msk.f32.vlgmr.msra.gmra.mxu1 %vm76_vm0, %v44_v15  ;;  %651 = vmatpush.msra.mxu2 %v52_v16 }
  0x1d   :  { %618 = vmatmul.msk.f32.vlgmr.msra.gmra.mxu2 %vm76_vm0, %v50_v17  ;;  %626 = vmatmul.msk.f32.vlgmr.msra.gmra.mxu3 %vm76_vm0, %v50_v17 }
  0x1e   :  { %191 = vmatpush.msrb.mxu2 %v75_v18  ;;  %116 = vmatpush.msra.mxu0 %v52_v16 }
  0x1f   :  { %612 = vmatmul.msk.f32.vlgmr.msra.gmra.mxu0 %vm76_vm0, %v44_v15 }
  0x20   :  { %192 = vmatpush.msrb.mxu2 %v72_v19 }
  0x22   :  { %193 = vmatpush.msrb.mxu2 %v69_v20 }
  0x24   :  { %621 = vmatmul.msk.f32.gmra.mxu1 %vm76_vm0, %v45_v21  ;;  %194 = vmatpush.msrb.mxu2 %v66_v22 }
  0x25   :  { %619 = vmatmul.msk.f32.gmra.mxu2 %vm76_vm0, %v51_v23  ;;  %627 = vmatmul.msk.f32.gmra.mxu3 %vm76_vm0, %v51_v23 }
  0x26   :  { %195 = vmatpush.msrb.mxu2 %v63_v24 }
  0x27   :  { %613 = vmatmul.msk.f32.gmra.mxu0 %vm76_vm0, %v45_v21 }
  0x28   :  { %196 = vmatpush.msrb.mxu2 %v60_v25 }
  0x2a   :  { %197 = vmatpush.msrb.mxu2 %v57_v26 }
  0x2c   :  { %622 = vmatmul.msk.f32.gmra.mxu1 %vm76_vm0, %v46_v27  ;;  %198 = vmatpush.msrb.mxu2 %v54_v28 }
  0x2d   :  { %628 = vmatmul.msk.f32.vlgmr.msrb.gmra.mxu2 %vm76_vm0, %v44_v15 }
  0x2f   :  { %614 = vmatmul.msk.f32.gmra.mxu0 %vm76_vm0, %v46_v27 }
  0x34   :  { %623 = vmatmul.msk.f32.gmra.mxu1 %vm76_vm0, %v47_v29 }
  0x35   :  { %629 = vmatmul.msk.f32.gmra.mxu2 %vm76_vm0, %v45_v21 }
  0x37   :  { %615 = vmatmul.msk.f32.gmra.mxu0 %vm76_vm0, %v47_v29 }
  0x3c   :  { %624 = vmatmul.msk.f32.gmra.mxu1 %vm76_vm0, %v48_v30 }
  0x3d   :  { %630 = vmatmul.msk.f32.gmra.mxu2 %vm76_vm0, %v46_v27 }
  0x3f   :  { %616 = vmatmul.msk.f32.gmra.mxu0 %vm76_vm0, %v48_v30 }
  0x44   :  { %625 = vmatmul.msk.f32.gmra.mxu1 %vm76_vm0, %v49_v31 }
  0x45   :  { %631 = vmatmul.msk.f32.gmra.mxu2 %vm76_vm0, %v47_v29 }
  0x47   :  { %617 = vmatmul.msk.f32.gmra.mxu0 %vm76_vm0, %v49_v31 }
  0x4d   :  { %632 = vmatmul.msk.f32.gmra.mxu2 %vm76_vm0, %v48_v30 }
  0x55   :  { %633 = vmatmul.msk.f32.gmra.mxu2 %vm76_vm0, %v49_v31 }
  0x5d   :  { %634 = vmatmul.msk.f32.gmra.mxu2 %vm76_vm0, %v50_v17 }
  0x65   :  { %635 = vmatmul.msk.f32.gmra.mxu2 %vm76_vm0, %v51_v23 }
  0x99   :  { %v159_v32 = vpop.f32.mrf.mxu1 }
  0xa0   :  { %v136_v33 = vpop.f32.mrf.mxu2  ;;  %v177_v39 = vpop.f32.mrf.mxu3 }
  0xa1   :  { %v162_v34 = vpop.f32.mrf.mxu1 }
  0xa8   :  { %v139_v35 = vpop.f32.mrf.mxu2  ;;  %v180_v42 = vpop.f32.mrf.mxu3 }
  0xa9   :  { %v165_v36 = vpop.f32.mrf.mxu1  ;;  %567 = vmatpush.msrb.mxu1 %v139_v35 }
  0xab   :  { %568 = vmatpush.msrb.mxu1 %v136_v33 }
  0xb0   :  { %v200_v37 = vpop.f32.mrf.mxu2 }
  0xb1   :  { %v168_v38 = vpop.f32.mrf.mxu1 }
  0xb2   :  { %236 = vmatpush.xpose.msrb.mxu3 %v168_v38 }
  0xb6   :  { %237 = vmatpush.xpose.msrb.mxu3 %v165_v36 }
  0xb8   :  { %v203_v41 = vpop.f32.mrf.mxu2 }
  0xb9   :  { %v171_v40 = vpop.f32.mrf.mxu1 }
  0xba   :  { %238 = vmatpush.xpose.msrb.mxu3 %v162_v34 }
  0xbe   :  { %239 = vmatpush.xpose.msrb.mxu3 %v159_v32 }
  0xc0   :  { %v206_v44 = vpop.f32.mrf.mxu2 }
  0xc1   :  { %240 = vmatmul.f32.vlgmr.msrb.gmra.mxu3 %v200_v37  ;;  %v174_v43 = vpop.f32.mrf.mxu1 }
  0xc2   :  { %265 = vmatpush.xpose.msra.mxu3 %v180_v42 }
  0xc6   :  { %266 = vmatpush.xpose.msra.mxu3 %v177_v39  ;;  %v118_v39 = vpop.f32.mrf.mxu0 }
  0xc8   :  { %v209_v45 = vpop.f32.mrf.mxu2 }
  0xc9   :  { %243 = vmatmul.f32.gmra.mxu3 %v203_v41 }
  0xca   :  { %267 = vmatpush.xpose.msra.mxu3 %v174_v43 }
  0xce   :  { %268 = vmatpush.xpose.msra.mxu3 %v171_v40 }
  0xd0   :  { %v212_v46 = vpop.f32.mrf.mxu2 }
  0xd1   :  { %246 = vmatmul.f32.gmra.mxu3 %v206_v44 }
  0xd8   :  { %v215_v47 = vpop.f32.mrf.mxu2 }
  0xd9   :  { %249 = vmatmul.f32.gmra.mxu3 %v209_v45 }
  0xe0   :  { %v218_v48 = vpop.f32.mrf.mxu2 }
  0xe1   :  { %269 = vmatmul.f32.vlgmr.msra.gmra.mxu3 %v212_v46 }
  0xe8   :  { %v221_v49 = vpop.f32.mrf.mxu2 }
  0xe9   :  { %272 = vmatmul.f32.gmra.mxu3 %v215_v47 }
  0xf1   :  { %275 = vmatmul.f32.gmra.mxu3 %v218_v48  ;;  %v121_v48 = vpop.f32.mrf.mxu0 }
  0xf9   :  { %278 = vmatmul.f32.gmra.mxu3 %v221_v49  ;;  %v124_v57 = vpop.f32.mrf.mxu0 }
 0x144   :  { %v241_v53 = vpop.f32.mrf.mxu3 }
 0x145   :  { %v282_v54 = vmul.f32 0.125, %v241_v53 }
 0x147   :  { %v301_v55 = vsel %vm297_vm1, %v282_v54, -inf }
 0x148   :  { %v310_v56 = vsel %vm309_vm2, %v301_v55, -inf }
 0x149   :  { %311 = vmax.xlane.f32.xlu0 %v310_v56 }
 0x14c   :  { %v244_v58 = vpop.f32.mrf.mxu3 }
 0x14d   :  { %v283_v59 = vmul.f32 0.125, %v244_v58 }
 0x14f   :  { %v302_v60 = vsel %vm298_vm3, %v283_v59, -inf }
 0x150   :  { %v313_v61 = vsel %vm309_vm2, %v302_v60, -inf }
 0x151   :  { %314 = vmax.xlane.f32.xlu1 %v313_v61 }
 0x154   :  { %v247_v63 = vpop.f32.mrf.mxu3 }
 0x155   :  { %v284_v0 = vmul.f32 0.125, %v247_v63 }
 0x157   :  { %v303_v1 = vsel %vm299_vm4, %v284_v0, -inf }
 0x158   :  { %v316_v2 = vsel %vm309_vm2, %v303_v1, -inf }
 0x159   :  { %317 = vmax.xlane.f32.xlu2 %v316_v2 }
 0x15c   :  { %v250_v3 = vpop.f32.mrf.mxu3 }
 0x15d   :  { %v285_v9 = vmul.f32 0.125, %v250_v3 }
 0x15f   :  { %v304_v12 = vsel %vm300_vm5, %v285_v9, -inf }
 0x160   :  { %v319_v14 = vsel %vm309_vm2, %v304_v12, -inf }
 0x164   :  { %v270_v4 = vpop.f32.mrf.mxu3 }
 0x165   :  { %v286_v5 = vmul.f32 0.125, %v270_v4 }
 0x167   :  { %v305_v7 = vsel %vm297_vm1, %v286_v5, -inf }
 0x168   :  { %v322_v8 = vsel %vm309_vm2, %v305_v7, -inf }
 0x169   :  { %323 = vmax.xlane.f32.xlu0 %v322_v8 }
 0x16c   :  { %v273_v10 = vpop.f32.mrf.mxu3 }
 0x16d   :  { %v287_v11 = vmul.f32 0.125, %v273_v10 }
 0x16f   :  { %v306_v13 = vsel %vm298_vm3, %v287_v11, -inf }
 0x170   :  { %v325_v15 = vsel %vm309_vm2, %v306_v13, -inf }
 0x171   :  { %320 = vmax.xlane.f32.xlu0 %v319_v14  ;;  %326 = vmax.xlane.f32.xlu1 %v325_v15 }
 0x174   :  { %v276_v16 = vpop.f32.mrf.mxu3 }
 0x175   :  { %v288_v17 = vmul.f32 0.125, %v276_v16 }
 0x177   :  { %v307_v18 = vsel %vm299_vm4, %v288_v17, -inf }
 0x178   :  { %v328_v19 = vsel %vm309_vm2, %v307_v18, -inf }
 0x179   :  { %329 = vmax.xlane.f32.xlu2 %v328_v19 }
 0x17c   :  { %v279_v20 = vpop.f32.mrf.mxu3 }
 0x17d   :  { %v289_v21 = vmul.f32 0.125, %v279_v20 }
 0x17f   :  { %v308_v22 = vsel %vm300_vm5, %v289_v21, -inf }
 0x180   :  { %v331_v23 = vsel %vm309_vm2, %v308_v22, -inf }
 0x181   :  { %332 = vmax.xlane.f32.xlu1 %v331_v23 }
 0x1bc   :  { %v312_v24 = vpop.xlane.xlu0 %311 }
 0x1bd   :  { %v334_v25 = vsub.f32 %v301_v55, %v312_v24 }
 0x1bf   :  { %v342_v26 = vmul.f32 1.442695, %v334_v25 }
 0x1c1   :  { %667 = vpow2.f32 %v342_v26 }
 0x1c4   :  { %v315_v27 = vpop.xlane.xlu1 %314 }
 0x1c5   :  { %v335_v28 = vsub.f32 %v302_v60, %v315_v27 }
 0x1c7   :  { %v848_v29 = vpop.eup %667  ;;  %v344_v30 = vmul.f32 1.442695, %v335_v28 }
 0x1c8   :  { %v358_v31 = vsel %vm309_vm2, %v848_v29, 0.0 }
 0x1c9   :  { %669 = vpow2.f32 %v344_v30  ;;  %359 = vadd.xlane.f32.xlu2 %v358_v31 }
 0x1cc   :  { %v318_v34 = vpop.xlane.xlu2 %317 }
 0x1cd   :  { %v336_v37 = vsub.f32 %v303_v1, %v318_v34  ;;  %v127_v1 = vpop.f32.mrf.mxu0 }
 0x1ce   :  { %526 = vmatpush.msrb.mxu0 %v127_v1 }
 0x1cf   :  { %v852_v32 = vpop.eup %669  ;;  %v346_v40 = vmul.f32 1.442695, %v336_v37 }
 0x1d0   :  { %v361_v33 = vsel %vm309_vm2, %v852_v32, 0.0  ;;  %527 = vmatpush.msrb.mxu0 %v124_v57 }
 0x1d1   :  { %362 = vadd.xlane.f32.xlu1 %v361_v33 }
 0x1d2   :  { %528 = vmatpush.msrb.mxu0 %v121_v48 }
 0x1d4   :  { %529 = vmatpush.msrb.mxu0 %v118_v39 }
 0x1d5   :  { %v130_v4 = vpop.f32.mrf.mxu0 }
 0x1dc   :  { %v324_v35 = vpop.xlane.xlu0 %323 }
 0x1dd   :  { %v338_v36 = vsub.f32 %v305_v7, %v324_v35  ;;  %v133_v5 = vpop.f32.mrf.mxu0 }
 0x1de   :  { %569 = vmatpush.msrb.mxu1 %v133_v5 }
 0x1df   :  { %v350_v38 = vmul.f32 1.442695, %v338_v36 }
 0x1e0   :  { %570 = vmatpush.msrb.mxu1 %v130_v4 }
 0x1e1   :  { %671 = vpow2.f32 %v350_v38 }
 0x1e2   :  { %673 = vpow2.f32 %v346_v40 }
 0x1e4   :  { %v327_v41 = vpop.xlane.xlu1 %326  ;;  %v321_v42 = vpop.xlane.xlu0 %320 }
 0x1e5   :  { %v339_v43 = vsub.f32 %v306_v13, %v327_v41  ;;  %v337_v46 = vsub.f32 %v304_v12, %v321_v42 }
 0x1e7   :  { %v856_v44 = vpop.eup %671  ;;  %v352_v45 = vmul.f32 1.442695, %v339_v43  ;;  %v348_v49 = vmul.f32 1.442695, %v337_v46 }
 0x1e8   :  { %v370_v47 = vsel %vm309_vm2, %v856_v44, 0.0  ;;  %v860_v51 = vpop.eup %673 }
 0x1e9   :  { %371 = vadd.xlane.f32.xlu0 %v370_v47  ;;  %675 = vpow2.f32 %v352_v45  ;;  %v364_v55 = vsel %vm309_vm2, %v860_v51, 0.0 }
 0x1ea   :  { %677 = vpow2.f32 %v348_v49 }
 0x1ec   :  { %v330_v50 = vpop.xlane.xlu2 %329 }
 0x1ed   :  { %v340_v52 = vsub.f32 %v307_v18, %v330_v50 }
 0x1ef   :  { %v354_v53 = vmul.f32 1.442695, %v340_v52  ;;  %v862_v54 = vpop.eup %675 }
 0x1f0   :  { %v373_v56 = vsel %vm309_vm2, %v862_v54, 0.0  ;;  %v868_v60 = vpop.eup %677 }
 0x1f1   :  { %679 = vpow2.f32 %v354_v53  ;;  %365 = vadd.xlane.f32.xlu0 %v364_v55  ;;  %374 = vadd.xlane.f32.xlu2 %v373_v56  ;;  %v367_v0 = vsel %vm309_vm2, %v868_v60, 0.0 }
 0x1f4   :  { %v333_v58 = vpop.xlane.xlu1 %332 }
 0x1f5   :  { %v341_v59 = vsub.f32 %v308_v22, %v333_v58 }
 0x1f7   :  { %v870_v61 = vpop.eup %679  ;;  %v356_v62 = vmul.f32 1.442695, %v341_v59 }
 0x1f8   :  { %v376_v63 = vsel %vm309_vm2, %v870_v61, 0.0 }
 0x1f9   :  { %681 = vpow2.f32 %v356_v62  ;;  %377 = vadd.xlane.f32.xlu1 %v376_v63  ;;  %368 = vadd.xlane.f32.xlu2 %v367_v0 }
 0x1ff   :  { %v876_v2 = vpop.eup %681 }
 0x200   :  { %v379_v3 = vsel %vm309_vm2, %v876_v2, 0.0 }
 0x201   :  { %380 = vadd.xlane.f32.xlu0 %v379_v3 }
 0x23c   :  { %v360_v6 = vpop.xlane.xlu2 %359 }
 0x23d   :  { %683 = vrcp.f32 %v360_v6  ;;  %v393_v11 = vand.u32 2147483648, %v360_v6  ;;  %v391_v13 = vand.u32 2147483647, %v360_v6  ;;  %vm387_vm7 = vweird.f32 %v360_v6 }
 0x23f   :  { %v394_v16 = vor.u32 1.1754944e-38, %v393_v11  ;;  %vm392_vm9 = vcmp.eq.f32.partialorder %v391_v13, 8.507059e+37 }
 0x243   :  { %v684_v7 = vpop.eup %683 }
 0x244   :  { %v383_v8 = vmul.f32 %v684_v7, %v360_v6  ;;  %v363_v9 = vpop.xlane.xlu1 %362  ;;  %vm388_vm6 = vweird.f32 %v684_v7 }
 0x245   :  { %685 = vrcp.f32 %v363_v9  ;;  %vm389_vm8 = vmor %vm387_vm7, %vm388_vm6  ;;  %v408_v22 = vand.u32 2147483648, %v363_v9  ;;  %v406_v24 = vand.u32 2147483647, %v363_v9  ;;  %vm402_vm11 = vweird.f32 %v363_v9 }
 0x246   :  { %v384_v10 = vsub.f32 1.0, %v383_v8 }
 0x247   :  { %v409_v26 = vor.u32 1.1754944e-38, %v408_v22  ;;  %vm407_vm13 = vcmp.eq.f32.partialorder %v406_v24, 8.507059e+37 }
 0x248   :  { %v385_v12 = vmul.f32 %v684_v7, %v384_v10 }
 0x24a   :  { %v386_v14 = vadd.f32 %v684_v7, %v385_v12 }
 0x24b   :  { %v686_v15 = vpop.eup %685 }
 0x24c   :  { %v398_v17 = vmul.f32 %v686_v15, %v363_v9  ;;  %v390_v18 = vsel %vm389_vm8, %v684_v7, %v386_v14  ;;  %vm403_vm10 = vweird.f32 %v686_v15 }
 0x24d   :  { %v395_v19 = vsel %vm392_vm9, %v394_v16, %v390_v18  ;;  %vm404_vm12 = vmor %vm402_vm11, %vm403_vm10 }
 0x24e   :  { %v399_v20 = vsub.f32 1.0, %v398_v17  ;;  %v396_v21 = vmul.f32 %v848_v29, %v395_v19 }
 0x250   :  { %v400_v23 = vmul.f32 %v686_v15, %v399_v20  ;;  %636 = vmatmul.msk.f32.vlgmr.msrb.gmra.mxu0 %vm309_vm2, %v396_v21 }
 0x252   :  { %v401_v25 = vadd.f32 %v686_v15, %v400_v23 }
 0x254   :  { %v405_v27 = vsel %vm404_vm12, %v686_v15, %v401_v25 }
 0x255   :  { %v410_v28 = vsel %vm407_vm13, %v409_v26, %v405_v27 }
 0x256   :  { %v411_v30 = vmul.f32 %v852_v32, %v410_v28 }
 0x258   :  { %637 = vmatmul.msk.f32.gmra.mxu0 %vm309_vm2, %v411_v30 }
 0x25c   :  { %v372_v31 = vpop.xlane.xlu0 %371 }
 0x25d   :  { %687 = vrcp.f32 %v372_v31  ;;  %v453_v39 = vand.u32 2147483648, %v372_v31  ;;  %vm447_vm15 = vweird.f32 %v372_v31  ;;  %v451_v41 = vand.u32 2147483647, %v372_v31 }
 0x25f   :  { %v454_v48 = vor.u32 1.1754944e-38, %v453_v39  ;;  %vm452_vm1 = vcmp.eq.f32.partialorder %v451_v41, 8.507059e+37 }
 0x263   :  { %v688_v29 = vpop.eup %687 }
 0x264   :  { %v443_v33 = vmul.f32 %v688_v29, %v372_v31  ;;  %v366_v34 = vpop.xlane.xlu0 %365  ;;  %v375_v35 = vpop.xlane.xlu2 %374  ;;  %vm448_vm14 = vweird.f32 %v688_v29 }
 0x265   :  { %689 = vrcp.f32 %v366_v34  ;;  %vm449_vm0 = vmor %vm447_vm15, %vm448_vm14  ;;  %v423_v53 = vand.u32 2147483648, %v366_v34  ;;  %v468_v57 = vand.u32 2147483648, %v375_v35  ;;  %v421_v59 = vand.u32 2147483647, %v366_v34 }
 0x266   :  { %v444_v36 = vsub.f32 1.0, %v443_v33  ;;  %691 = vrcp.f32 %v375_v35  ;;  %vm417_vm4 = vweird.f32 %v366_v34  ;;  %v466_v63 = vand.u32 2147483647, %v375_v35 }
 0x267   :  { %v424_v5 = vor.u32 1.1754944e-38, %v423_v53  ;;  %vm462_vm7 = vweird.f32 %v375_v35  ;;  %v469_v8 = vor.u32 1.1754944e-38, %v468_v57  ;;  %vm422_vm8 = vcmp.eq.f32.partialorder %v421_v59, 8.507059e+37 }
 0x268   :  { %v445_v37 = vmul.f32 %v688_v29, %v444_v36  ;;  %vm467_vm10 = vcmp.eq.f32.partialorder %v466_v63, 8.507059e+37 }
 0x26a   :  { %v446_v38 = vadd.f32 %v688_v29, %v445_v37 }
 0x26b   :  { %v690_v40 = vpop.eup %689 }
 0x26c   :  { %v692_v42 = vpop.eup %691  ;;  %v413_v32 = vmul.f32 %v690_v40, %v366_v34  ;;  %v884_v43 = vpop.xlane.xlu1 %377  ;;  %v450_v47 = vsel %vm449_vm0, %v688_v29, %v446_v38  ;;  %vm418_vm3 = vweird.f32 %v690_v40 }
 0x26d   :  { %v458_v45 = vmul.f32 %v692_v42, %v375_v35  ;;  %v886_v46 = vpop.xlane.xlu2 %368  ;;  %693 = vrcp.f32 %v884_v43  ;;  %v455_v55 = vsel %vm452_vm1, %v454_v48, %v450_v47  ;;  %vm892_vm5 = vmor %vm417_vm4, %vm418_vm3  ;;  %vm463_vm6 = vweird.f32 %v692_v42 }
 0x26e   :  { %v414_v49 = vsub.f32 1.0, %v413_v32  ;;  %695 = vrcp.f32 %v886_v46  ;;  %v456_v58 = vmul.f32 %v856_v44, %v455_v55  ;;  %v481_v11 = vand.u32 2147483647, %v884_v43  ;;  %vm464_vm9 = vmor %vm462_vm7, %vm463_vm6 }
 0x26f   :  { %v459_v50 = vsub.f32 1.0, %v458_v45  ;;  %v483_v14 = vand.u32 2147483648, %v884_v43  ;;  %v438_v17 = vand.u32 2147483648, %v886_v46  ;;  %v436_v21 = vand.u32 2147483647, %v886_v46 }
 0x270   :  { %v415_v52 = vmul.f32 %v690_v40, %v414_v49  ;;  %640 = vmatmul.msk.f32.vlgmr.msrb.gmra.mxu1 %vm309_vm2, %v456_v58  ;;  %vm477_vm13 = vweird.f32 %v884_v43  ;;  %vm432_vm14 = vweird.f32 %v886_v46  ;;  %vm482_vm1 = vcmp.eq.f32.partialorder %v481_v11, 8.507059e+37 }
 0x271   :  { %v460_v56 = vmul.f32 %v692_v42, %v459_v50  ;;  %v439_v26 = vor.u32 1.1754944e-38, %v438_v17  ;;  %vm437_vm3 = vcmp.eq.f32.partialorder %v436_v21, 8.507059e+37 }
 0x272   :  { %v416_v62 = vadd.f32 %v690_v40, %v415_v52 }
 0x273   :  { %v694_v0 = vpop.eup %693  ;;  %v461_v3 = vadd.f32 %v692_v42, %v460_v56 }
 0x274   :  { %v696_v4 = vpop.eup %695  ;;  %v473_v6 = vmul.f32 %v694_v0, %v884_v43  ;;  %v381_v7 = vpop.xlane.xlu0 %380  ;;  %v420_v44 = vsel %vm892_vm5, %v690_v40, %v416_v62  ;;  %vm478_vm11 = vweird.f32 %v694_v0 }
 0x275   :  { %v428_v9 = vmul.f32 %v696_v4, %v886_v46  ;;  %697 = vrcp.f32 %v381_v7  ;;  %v425_v12 = vsel %vm422_vm8, %v424_v5, %v420_v44  ;;  %v465_v16 = vsel %vm464_vm9, %v692_v42, %v461_v3  ;;  %vm479_vm15 = vmor %vm477_vm13, %vm478_vm11 }
 0x276   :  { %v474_v10 = vsub.f32 1.0, %v473_v6  ;;  %v426_v15 = vmul.f32 %v860_v51, %v425_v12  ;;  %v470_v19 = vsel %vm467_vm10, %v469_v8, %v465_v16  ;;  %vm433_vm12 = vweird.f32 %v696_v4 }
 0x277   :  { %v429_v13 = vsub.f32 1.0, %v428_v9  ;;  %v471_v22 = vmul.f32 %v862_v54, %v470_v19  ;;  %v484_v51 = vor.u32 1.1754944e-38, %v483_v14  ;;  %vm434_vm0 = vmor %vm432_vm14, %vm433_vm12  ;;  %v498_v33 = vand.u32 2147483648, %v381_v7 }
 0x278   :  { %v475_v18 = vmul.f32 %v694_v0, %v474_v10  ;;  %638 = vmatmul.msk.f32.gmra.mxu0 %vm309_vm2, %v426_v15  ;;  %v496_v37 = vand.u32 2147483647, %v381_v7  ;;  %vm492_vm5 = vweird.f32 %v381_v7 }
 0x279   :  { %v430_v20 = vmul.f32 %v696_v4, %v429_v13  ;;  %641 = vmatmul.msk.f32.gmra.mxu1 %vm309_vm2, %v471_v22  ;;  %v499_v39 = vor.u32 1.1754944e-38, %v498_v33 }
 0x27a   :  { %v476_v23 = vadd.f32 %v694_v0, %v475_v18  ;;  %vm497_vm7 = vcmp.eq.f32.partialorder %v496_v37, 8.507059e+37 }
 0x27b   :  { %v698_v24 = vpop.eup %697  ;;  %v431_v25 = vadd.f32 %v696_v4, %v430_v20 }
 0x27c   :  { %v488_v27 = vmul.f32 %v698_v24, %v381_v7  ;;  %v480_v28 = vsel %vm479_vm15, %v694_v0, %v476_v23  ;;  %vm493_vm4 = vweird.f32 %v698_v24 }
 0x27d   :  { %v435_v30 = vsel %vm434_vm0, %v696_v4, %v431_v25  ;;  %v485_v31 = vsel %vm482_vm1, %v484_v51, %v480_v28  ;;  %vm494_vm6 = vmor %vm492_vm5, %vm493_vm4 }
 0x27e   :  { %v489_v54 = vsub.f32 1.0, %v488_v27  ;;  %v440_v29 = vsel %vm437_vm3, %v439_v26, %v435_v30  ;;  %v486_v35 = vmul.f32 %v870_v61, %v485_v31 }
 0x27f   :  { %v441_v34 = vmul.f32 %v868_v60, %v440_v29 }
 0x280   :  { %v490_v36 = vmul.f32 %v698_v24, %v489_v54 }
 0x281   :  { %639 = vmatmul.msk.f32.gmra.mxu0 %vm309_vm2, %v441_v34  ;;  %642 = vmatmul.msk.f32.gmra.mxu1 %vm309_vm2, %v486_v35 }
 0x282   :  { %v491_v38 = vadd.f32 %v698_v24, %v490_v36 }
 0x284   :  { %v495_v40 = vsel %vm494_vm6, %v698_v24, %v491_v38 }
 0x285   :  { %v500_v41 = vsel %vm497_vm7, %v499_v39, %v495_v40 }
 0x286   :  { %v501_v42 = vmul.f32 %v876_v2, %v500_v41 }
 0x289   :  { %643 = vmatmul.msk.f32.gmra.mxu1 %vm309_vm2, %v501_v42 }
 0x2cd   :  { %v531_v60 = vpop.f32.mrf.mxu0 }
 0x2ce   :  { %584 = vst [vmem:[#allocation7] sm:$0xff] %v531_v60 }
 0x2d5   :  { %v534_v61 = vpop.f32.mrf.mxu0 }
 0x2d6   :  { %585 = vst [vmem:[#allocation7 + $0x8] sm:$0xff] %v534_v61 }
 0x2ed   :  { %v572_v32 = vpop.f32.mrf.mxu1 }
 0x2ee   :  { %588 = vst [vmem:[#allocation7 + $0x20] sm:$0xff] %v572_v32 }
 0x2f5   :  { %v537_v43 = vpop.f32.mrf.mxu0 }
 0x2f6   :  { %586 = vst [vmem:[#allocation7 + $0x10] sm:$0xff] %v537_v43  ;;  %v575_v45 = vpop.f32.mrf.mxu1 }
 0x2f7   :  { %589 = vst [vmem:[#allocation7 + $0x28] sm:$0xff] %v575_v45 }
 0x2fe   :  { %v540_v46 = vpop.f32.mrf.mxu0  ;;  %v578_v47 = vpop.f32.mrf.mxu1 }
 0x2ff   :  { %587 = vst [vmem:[#allocation7 + $0x18] sm:$0xff] %v540_v46 }
 0x300   :  { %590 = vst [vmem:[#allocation7 + $0x30] sm:$0xff] %v578_v47 }
 0x306   :  { %v581_v2 = vpop.f32.mrf.mxu1 }
 0x307   :  { %591 = vst [vmem:[#allocation7 + $0x38] sm:$0xff] %v581_v2 }
 0x308   :  { %604 = dma.vmem_to_hbm [thread:$0]  %s597_s22, 1024, %s599_s25, [#allocation4], %s778_s17, %s778_s17, %s779_s18  }
 0x309   :  { %775 = dma.done.wait [#allocation4], 1024  }
 0x30a   :  { %776 = vsyncadd [#allocation4], 4294966272 }
 0x30b   :  { %609 = vsyncpa [#allocation3], 1 }
 0x30c   :  { %610 = vsyncpa [#allocation6], 1 }
 0x30d   :  { %611 = vsyncpa [#allocation4], 1 }

</bundles_post_ra>
